<compile_context>
chip_gen: v7x
topology: tpu7x:2x2x1
jax: 0.10.0
libtpu: 0.0.40
codegen_flags: <defaults>
</compile_context>

<pallas_src>
import math

import jax
import jax.numpy as jnp
from jax.experimental import pallas as pl
from jax.experimental.pallas import tpu as pltpu


# ---------------------------------------------------------------------------
# Kernel: elementwise add of the PE tile onto one (1, tile_r, L) tile of x.
# ---------------------------------------------------------------------------
def _pos_embed_kernel(x_ref, pe_ref, o_ref):
    # x_ref/o_ref: (1, tile_r, L); pe_ref: (tile_r, L). Plain 2D vadd, no broadcast.
    o_ref[0] = x_ref[0] + pe_ref[...]


# ---------------------------------------------------------------------------
# PE buffer construction (mirrors the torch __init__ registered buffer)
# ---------------------------------------------------------------------------
def make_positional_embedding(d_model, seq_len, dtype=jnp.float32):
    position = jnp.arange(seq_len, dtype=jnp.float32)[:, None]
    div_term = jnp.exp(jnp.arange(0, d_model, 2, dtype=jnp.float32)
                       * (-math.log(10000.0) / d_model))
    pe = jnp.zeros((seq_len, d_model), jnp.float32)
    pe = pe.at[:, 0::2].set(jnp.sin(position * div_term))
    pe = pe.at[:, 1::2].set(jnp.cos(position * div_term))
    return pe.astype(dtype)


# ---------------------------------------------------------------------------
# Tile sizing: biggest multiple-of-8 row tile whose double-buffered blocks
# (x + pe + out, 2 buffers each) fit a conservative 8 MiB VMEM budget.
# ---------------------------------------------------------------------------
def _choose_tile_rows(rows, lane, itemsize, budget_bytes=8 * 1024 * 1024):
    bytes_per_row = 6 * lane * itemsize          # 3 arrays x 2 pipeline buffers
    max_rows = max(1, budget_bytes // bytes_per_row)
    if rows <= max_rows:
        return rows                              # single full-extent block along rows
    return max(8, (max_rows // 8) * 8)


# ---------------------------------------------------------------------------
# Wrapper: grid over (row tiles, batch); lane axis is 128-dense where possible.
# ---------------------------------------------------------------------------
@jax.jit
def positional_embedding_forward(x, pe):
    B, S, D = x.shape
    pe_s = pe[:S].astype(x.dtype)                # static slice + dtype match to x

    # Lane-dense view: fold (S, D) -> (R, 128) when d_model is not a multiple of 128.
    # The op is purely elementwise so this reshape is exact and free.
    if D % 128 != 0 and (S * D) % 128 == 0:
        L = 128
        R = (S * D) // L
    else:
        L = D
        R = S
    x_v = x.reshape(B, R, L)
    pe_v = pe_s.reshape(R, L)

    tile_r = _choose_tile_rows(R, L, x.dtype.itemsize)

    # Batch is the innermost grid axis: PE's block index depends only on the row tile,
    # so the PE tile is NOT re-DMA'd for every batch element.
    grid = (pl.cdiv(R, tile_r), B)

    out = pl.pallas_call(
        _pos_embed_kernel,
        out_shape=jax.ShapeDtypeStruct((B, R, L), x.dtype),
        grid=grid,
        in_specs=[pl.BlockSpec((1, tile_r, L), lambda r, b: (b, r, 0)),
                  pl.BlockSpec((tile_r, L), lambda r, b: (r, 0))],
        out_specs=pl.BlockSpec((1, tile_r, L), lambda r, b: (b, r, 0)),
        compiler_params=pltpu.CompilerParams(
            dimension_semantics=("parallel", "arbitrary")),
    )(x_v, pe_v)
    return out.reshape(B, S, D)


if __name__ == "__main__":
    B, S, D = 2, 8, 32          # batch, input sequence length, d_model
    MAX_LEN = 16                # seq_len of the registered PE buffer

    key = jax.random.PRNGKey(0)
    x = jax.random.normal(key, (B, S, D), jnp.float32)
    pe = make_positional_embedding(D, MAX_LEN)

    out = positional_embedding_forward(x, pe)
    out = jax.block_until_ready(out)

    # Pure-JAX reference of the torch forward (dropout = identity in eval).
    ref = x + pe[None, :S, :]
    assert out.shape == (B, S, D)
    assert jnp.allclose(out, ref, atol=1e-6, rtol=1e-6)

    print("KERNEL_OK")
</pallas_src>

<mosaic_0001>
module attributes {stable_mosaic.version = 11 : i64} {
  func.func @_pos_embed_kernel(%arg0: i32, %arg1: i32, %arg2: memref<1x2x128xf32, #tpu.memory_space<vmem>>, %arg3: memref<2x128xf32, #tpu.memory_space<vmem>>, %arg4: memref<1x2x128xf32, #tpu.memory_space<vmem>>) attributes {dimension_semantics = [#tpu.dimension_semantics<parallel>, #tpu.dimension_semantics<arbitrary>], iteration_bounds = array<i64: 1, 2>, scalar_prefetch = 0 : i64, scratch_operands = 0 : i64, tpu.core_type = #tpu.core_type<tc>, window_params = [{transform_indices = @transform_0, window_bounds = array<i64: 1, 2, 128>}, {transform_indices = @transform_1, window_bounds = array<i64: 2, 128>}, {transform_indices = @transform_2, window_bounds = array<i64: 1, 2, 128>}]} {
    %c0 = arith.constant 0 : index
    %c0_0 = arith.constant 0 : index
    %c0_1 = arith.constant 0 : index
    %0 = vector.load %arg2[%c0, %c0_0, %c0_1] : memref<1x2x128xf32, #tpu.memory_space<vmem>>, vector<1x2x128xf32>
    %1 = vector.shape_cast %0 : vector<1x2x128xf32> to vector<2x128xf32>
    %c0_2 = arith.constant 0 : index
    %c0_3 = arith.constant 0 : index
    %2 = vector.load %arg3[%c0_2, %c0_3] : memref<2x128xf32, #tpu.memory_space<vmem>>, vector<2x128xf32>
    %3 = arith.addf %1, %2 : vector<2x128xf32>
    %c0_4 = arith.constant 0 : index
    %c0_5 = arith.constant 0 : index
    %c0_6 = arith.constant 0 : index
    %4 = vector.load %arg4[%c0_4, %c0_5, %c0_6] : memref<1x2x128xf32, #tpu.memory_space<vmem>>, vector<1x2x128xf32>
    %5 = vector.shape_cast %4 : vector<1x2x128xf32> to vector<2x128xf32>
    %6 = vector.shape_cast %3 : vector<2x128xf32> to vector<1x2x128xf32>
    tpu.vector_store %arg4[%c0_4, %c0_5, %c0_6], %6 {strides = array<i32>} : memref<1x2x128xf32, #tpu.memory_space<vmem>>, vector<1x2x128xf32>,
    return
  }
  func.func @transform_0(%arg0: i32, %arg1: i32) -> (i32, i32, i32) {
    %c0_i32 = arith.constant 0 : i32
    %c0_i32_0 = arith.constant 0 : i32
    return %arg1, %arg0, %c0_i32 : i32, i32, i32
  }
  func.func @transform_1(%arg0: i32, %arg1: i32) -> (i32, i32) {
    %c0_i32 = arith.constant 0 : i32
    %c0_i32_0 = arith.constant 0 : i32
    return %arg0, %c0_i32 : i32, i32
  }
  func.func @transform_2(%arg0: i32, %arg1: i32) -> (i32, i32, i32) {
    %c0_i32 = arith.constant 0 : i32
    %c0_i32_0 = arith.constant 0 : i32
    return %arg1, %arg0, %c0_i32 : i32, i32, i32
  }
}

</mosaic_0001>

<bundles_post_ra>
// kernel: positional_embedding_forward.1
= control target key start
LH: loop header
LB: loop body
LE: loop exit
PB: predicated region body
PF: predicated region fallthrough
CT: control target
= control target key end

     0   :  { %s354_s9 = smov 0   ;;  %s331_s10 = smov 0   ;;  %s368_s0 = inlined_call_operand.vmem [shape: f32[2,2,128], index: 0, kind: input, shape index: {}]   ;;  %s369_s1 = inlined_call_operand.vmem [shape: f32[2,128], index: 1, kind: input, shape index: {}]   ;;  %s370_s2 = inlined_call_operand.vmem [shape: f32[2,2,128], index: 2, kind: output, shape index: {}]  }
   0x1   :  { %s335_s11 = smov 0  }
   0x2 LB: > { %s21_s12 = sadd.s32 1, %s333_s10  ;;  %p286_p0 = scmp.ge.s32.totalorder %s337_s11, 1  ;;  %s337_s11 = sphi %s335_s11, %s12_s11   ;;  %s333_s10 = sphi %s331_s10, %s332_s10   ;;  %s329_s9 = sphi %s354_s9, %s371_s9  }
   0x3   : > { %p22_p1 = scmp.ge.s32.totalorder %s21_s12, 2  ;;  %p139_p2 = scmp.lt.s32.totalorder %s337_s11, 3 }
   0x5   : > { %s373_s12 = smov (%p22_p1, %s21_s12), 0  ;;  %p140_p3 = pnand %p286_p0, %p139_p2 }
   0x6   : > { %p169_p4 = scmp.lt.s32.totalorder (!%p140_p3), %s329_s9, 1  ;;  %v188_v0 = vld [vmem:[%s369_s1] sm:$0x3] (!%p140_p3) }
   0x7   : > { %143 = sbr.rel (%p140_p3) target bundleno = 21 (0x15), region = 28 }
   0xe   : > { %s375_s9 = smov (!%p169_p4, %s329_s9), 1 }
   0xf   : > { %s287_s13 = sshll.u32 %s375_s9, 1 }
  0x10   : > { %s175_s18 = scalar_lea.vmem %s368_s0, %s287_s13  ;;  %s186_s21 = scalar_lea.vmem %s370_s2, %s287_s13 }
  0x11   : > { %v187_v1 = vld [vmem:[%s175_s18] sm:$0x3] }
  0x12   : > { %v189_v2 = vadd.f32 %v188_v0, %v187_v1 }
  0x14   : > { %190 = vst [vmem:[%s186_s21] sm:$0x3] %v189_v2 }
  0x15 PF: > { %s12_s11 = sadd.s32 1, %s337_s11   ;;  %s371_s9 = smov %s333_s10 }
  0x16   : > { %p9_p5 = scmp.ge.s32.totalorder %s12_s11, 4   ;;  %s332_s10 = smov %s373_s12  }
  0x18   :  { %11 = sbr.rel (!%p9_p5) target bundleno = 2 (0x2), region = 61 }

</bundles_post_ra>
